<compile_context>
chip_gen: v6e
topology: v6e:2x2x1
jax: 0.10.0
libtpu: 0.0.40
codegen_flags: <defaults>
</compile_context>

<pallas_src>
import jax
import jax.numpy as jnp
from jax.experimental import pallas as pl
from jax.experimental.pallas import tpu as pltpu

C_IN = 200
C_OUT = 200


def conv1x1_kernel(w_ref, b_ref, x_ref, o_ref):
    # w_ref: (C_OUT, C_IN)   resident weight
    # b_ref: (C_OUT, 1)      resident bias
    # x_ref: (C_IN, T)       one spatial tile of one image (N dim squeezed)
    # o_ref: (C_OUT, T)
    acc = jnp.dot(w_ref[...], x_ref[...], preferred_element_type=jnp.float32)
    o_ref[...] = (acc + b_ref[...]).astype(o_ref.dtype)


def _choose_tile(hw):
    # Lane-dense spatial tile: multiple of 128, capped at 512 so that
    # double-buffered in/out tiles stay small on every TPU generation.
    if hw >= 512:
        return 512
    return max(128, ((hw + 127) // 128) * 128)


def conv1x1(x_nchw, weight, bias, *, tile=None):
    """1x1 conv forward (NCHW in / NCHW out).

    x_nchw: (N, C_IN, H, W) float32
    weight: (C_OUT, C_IN, 1, 1) float32  (PyTorch Conv2d weight layout)
    bias:   (C_OUT,) float32
    returns (N, C_OUT, H, W) float32
    """
    N, C, H, W = x_nchw.shape
    assert C == C_IN

    HW = H * W
    T = tile if tile is not None else _choose_tile(HW)
    HW_pad = pl.cdiv(HW, T) * T

    # Free reshape (no transpose): (N, C, H, W) -> (N, C, HW)
    x3 = x_nchw.reshape(N, C_IN, HW)
    if HW_pad != HW:
        x3 = jnp.pad(x3, ((0, 0), (0, 0), (0, HW_pad - HW)))

    w_mat = weight.reshape(C_OUT, C_IN)   # (Cout, Cin)
    b_mat = bias.reshape(C_OUT, 1)        # (Cout, 1) — lane-broadcast in kernel

    grid = (N, HW_pad // T)

    out = pl.pallas_call(
        conv1x1_kernel,
        out_shape=jax.ShapeDtypeStruct((N, C_OUT, HW_pad), x_nchw.dtype),
        grid_spec=pltpu.PrefetchScalarGridSpec(
            num_scalar_prefetch=0,
            grid=grid,
            in_specs=[
                pl.BlockSpec((C_OUT, C_IN), lambda n, j: (0, 0)),   # resident W
                pl.BlockSpec((C_OUT, 1), lambda n, j: (0, 0)),      # resident b
                pl.BlockSpec((None, C_IN, T), lambda n, j: (n, 0, j)),
            ],
            out_specs=pl.BlockSpec((None, C_OUT, T), lambda n, j: (n, 0, j)),
        ),
        compiler_params=pltpu.CompilerParams(
            dimension_semantics=("parallel", "parallel"),
        ),
        cost_estimate=pl.CostEstimate(
            flops=2 * N * HW_pad * C_IN * C_OUT,
            transcendentals=0,
            bytes_accessed=4 * (N * HW_pad * (C_IN + C_OUT) + C_IN * C_OUT + C_OUT),
        ),
    )(w_mat, b_mat, x3)

    if HW_pad != HW:
        out = out[:, :, :HW]
    return out.reshape(N, C_OUT, H, W)


if __name__ == "__main__":
    key = jax.random.PRNGKey(0)
    kx, kw, kb = jax.random.split(key, 3)

    # Small shapes consistent with the module: Conv2d(200, 200, 1) forces C=200.
    N, H, W = 2, 8, 8
    x = jax.random.normal(kx, (N, C_IN, H, W), dtype=jnp.float32)

    # Deterministic parameter init (PyTorch-default-like uniform bounds).
    bound = 1.0 / (C_IN ** 0.5)
    weight = jax.random.uniform(kw, (C_OUT, C_IN, 1, 1), jnp.float32, -bound, bound)
    bias = jax.random.uniform(kb, (C_OUT,), jnp.float32, -bound, bound)

    out = conv1x1(x, weight, bias)
    jax.block_until_ready(out)

    # Reference check against plain-JAX 1x1 conv (einsum over channels).
    ref = (jnp.einsum("nchw,oc->nohw", x, weight.reshape(C_OUT, C_IN))
           + bias[None, :, None, None])
    assert out.shape == (N, C_OUT, H, W)
    assert jnp.allclose(out, ref, atol=1e-4, rtol=1e-4)

    print("KERNEL_OK")
</pallas_src>

<mosaic_0001>
module attributes {stable_mosaic.version = 11 : i64} {
  func.func @conv1x1_kernel(%arg0: i32, %arg1: i32, %arg2: memref<200x200xf32, #tpu.memory_space<vmem>>, %arg3: memref<200x1xf32, #tpu.memory_space<vmem>>, %arg4: memref<1x200x128xf32, #tpu.memory_space<vmem>>, %arg5: memref<1x200x128xf32, #tpu.memory_space<vmem>>) attributes {dimension_semantics = [#tpu.dimension_semantics<parallel>, #tpu.dimension_semantics<parallel>], iteration_bounds = array<i64: 2, 1>, scalar_prefetch = 0 : i64, scratch_operands = 0 : i64, tpu.core_type = #tpu.core_type<tc>, window_params = [{pipeline_mode = #tpu.pipeline_mode<synchronous>, transform_indices = @transform_0, window_bounds = array<i64: 200, 200>}, {pipeline_mode = #tpu.pipeline_mode<synchronous>, transform_indices = @transform_1, window_bounds = array<i64: 200, 1>}, {transform_indices = @transform_2, window_bounds = array<i64: 1, 200, 128>}, {transform_indices = @transform_3, window_bounds = array<i64: 1, 200, 128>}]} {
    %c0 = arith.constant 0 : index
    %c0_0 = arith.constant 0 : index
    %0 = vector.load %arg2[%c0, %c0_0] : memref<200x200xf32, #tpu.memory_space<vmem>>, vector<200x200xf32>
    %c0_1 = arith.constant 0 : index
    %c0_2 = arith.constant 0 : index
    %c0_3 = arith.constant 0 : index
    %1 = vector.load %arg4[%c0_1, %c0_2, %c0_3] : memref<1x200x128xf32, #tpu.memory_space<vmem>>, vector<1x200x128xf32>
    %2 = vector.shape_cast %1 : vector<1x200x128xf32> to vector<200x128xf32>
    %cst = arith.constant dense<0.000000e+00> : vector<200x128xf32>
    %3 = tpu.matmul %0, %2, %cst {dimension_numbers = #tpu.dot_dimension_numbers<[1], [0], [0], [1], [0, 0, 1, 1], [], []>} : vector<200x200xf32>, vector<200x128xf32>, vector<200x128xf32> -> vector<200x128xf32>
    %c0_4 = arith.constant 0 : index
    %c0_5 = arith.constant 0 : index
    %4 = vector.load %arg3[%c0_4, %c0_5] : memref<200x1xf32, #tpu.memory_space<vmem>>, vector<200x1xf32>
    %5 = vector.broadcast %4 : vector<200x1xf32> to vector<200x128xf32>
    %6 = arith.addf %3, %5 : vector<200x128xf32>
    %c0_6 = arith.constant 0 : index
    %c0_7 = arith.constant 0 : index
    %c0_8 = arith.constant 0 : index
    %7 = vector.load %arg5[%c0_6, %c0_7, %c0_8] : memref<1x200x128xf32, #tpu.memory_space<vmem>>, vector<1x200x128xf32>
    %8 = vector.shape_cast %7 : vector<1x200x128xf32> to vector<200x128xf32>
    %9 = vector.shape_cast %6 : vector<200x128xf32> to vector<1x200x128xf32>
    tpu.vector_store %arg5[%c0_6, %c0_7, %c0_8], %9 {strides = array<i32>} : memref<1x200x128xf32, #tpu.memory_space<vmem>>, vector<1x200x128xf32>,
    return
  }
  func.func @transform_0(%arg0: i32, %arg1: i32) -> (i32, i32) {
    %c0_i32 = arith.constant 0 : i32
    %c0_i32_0 = arith.constant 0 : i32
    %c0_i32_1 = arith.constant 0 : i32
    return %c0_i32, %c0_i32_0 : i32, i32
  }
  func.func @transform_1(%arg0: i32, %arg1: i32) -> (i32, i32) {
    %c0_i32 = arith.constant 0 : i32
    %c0_i32_0 = arith.constant 0 : i32
    %c0_i32_1 = arith.constant 0 : i32
    return %c0_i32, %c0_i32_0 : i32, i32
  }
  func.func @transform_2(%arg0: i32, %arg1: i32) -> (i32, i32, i32) {
    %c0_i32 = arith.constant 0 : i32
    %c0_i32_0 = arith.constant 0 : i32
    return %arg0, %c0_i32, %arg1 : i32, i32, i32
  }
  func.func @transform_3(%arg0: i32, %arg1: i32) -> (i32, i32, i32) {
    %c0_i32 = arith.constant 0 : i32
    %c0_i32_0 = arith.constant 0 : i32
    return %arg0, %c0_i32, %arg1 : i32, i32, i32
  }
}

</mosaic_0001>

<bundles_post_ra>
// kernel: tpu_custom_call.1
= control target key start
LH: loop header
LB: loop body
LE: loop exit
PB: predicated region body
PF: predicated region fallthrough
CT: control target
= control target key end

     0   :  { %8 = vsyncpa [#allocation3], 0  ;;  %s1598_s0 = inlined_call_operand.hbm [shape: f32[200,200], index: 0, kind: input, shape index: {}]   ;;  %s1599_s1 = inlined_call_operand.vmem [shape: f32[200,1], index: 1, kind: input, shape index: {}]   ;;  %s1600_s2 = inlined_call_operand.hbm [shape: f32[2,200,128], index: 2, kind: input, shape index: {}]   ;;  %s1601_s3 = inlined_call_operand.hbm [shape: f32[2,200,128], index: 3, kind: output, shape index: {}]  }
   0x1   :  { %9 = vsyncpa [#allocation6], 0 }
   0x2   :  { %11 = vsyncpa [#allocation6 + $0x1], 0 }
   0x3   :  { %12 = vsyncpa [#allocation4], 0 }
   0x4   :  { %14 = vsyncpa [#allocation4 + $0x1], 0  ;;  %s1193_s12 = smov 0   ;;  %s1195_s13 = smov 0  }
   0x5   :  { %s1197_s14 = smov 0   ;;  %s1199_s15 = smov 0  }
   0x6   :  { %s1201_s16 = smov 0   ;;  %s1203_s17 = smov 0  }
   0x7 LB: > { %s849_s18 = sadd.s32 4294967295, %s1160_s17   ;;  %s850_s19 = sadd.s32 4294967294, %s1160_s17   ;;  %s1160_s17 = sphi %s1203_s17, %s20_s17   ;;  %s1156_s16 = sphi %s1201_s16, %s1617_s16   ;;  %s1152_s15 = sphi %s1199_s15, %s1616_s15   ;;  %s1148_s14 = sphi %s1197_s14, %s1615_s14   ;;  %s1144_s13 = sphi %s1195_s13, %s1614_s13   ;;  %s1140_s12 = sphi %s1193_s12, %s1613_s12  }
   0x8   : > { %p96_p0 = scmp.ne.s32.totalorder %s1144_s13, %s1140_s12  ;;  %p1227_p1 = scmp.eq.s32.totalorder %s849_s18, 0 }
   0x9   : > { %p1231_p2 = scmp.eq.s32.totalorder %s849_s18, 1  ;;  %p128_p3 = scmp.eq.s32.totalorder %s850_s19, 1 }
   0xa   : > { %p1237_p4 = por %p1227_p1, %p96_p0  ;;  %p851_p5 = scmp.ge.s32.totalorder %s1160_s17, 1 }
   0xb   : > { %p1242_p6 = por %p128_p3, %p96_p0  ;;  %p135_p7 = scmp.lt.s32.totalorder %s1160_s17, 3 }
   0xc   : > { %s1605_s22 = scalar_select %p1237_p4, 1, 0 }
   0xd   : > { %s1606_s23 = scalar_select %p1242_p6, 1, 0 }
   0xe   : > { %p1247_p8 = pnand %p851_p5, %p135_p7  ;;  %s1162_s25 = smov [#allocation2]  }
   0xf   : > { %s147_s26 = sshll.u32 %s1162_s25, 4  ;;  %p853_p10 = scmp.ge.s32.totalorder %s1160_s17, 2  ;;  %s148_s26 = int_to_ptr.vmem [resolvable:$true] %s147_s26 }
  0x10   : > { %p947_p9 = pneg %p1247_p8  ;;  %s32_s28 = sadd.s32 1, %s1156_s16 }
  0x11   : > { %s1033_s29 = scalar_lea.vmem %s148_s26, 6400  ;;  %p1041_p5 = scmp.lt.s32.totalorder %s148_s26, %s148_s26 }
  0x12   : > { %p1256_p11 = pnand %p947_p9, %p1227_p1  ;;  %p1034_p13 = scmp.ne.s32.totalorder %s148_s26, %s1033_s29 }
  0x13   : > { %p1042_p7 = scmp.lt.s32.totalorder %s1033_s29, %s1033_s29 }
  0x14   : > { %p1024_p12 = pneg %p1256_p11 }
  0x15   : > { %p1043_p6 = por %p1042_p7, %p1041_p5 }
  0x16   : > { %p1036_p0 = pnand %p1034_p13, %p1024_p12 }
  0x18   : > { %p1037_p3 = pneg %p1036_p0 }
  0x1a   : > { %p1044_p4 = pnand %p1043_p6, %p1037_p3 }
  0x1c   : > { %1047 = shalt.err (!%p1044_p4)
}
  0x1d   : > { %s1163_s30 = smov 256   ;;  %s1164_s4 = smov 16  }
  0x1e   : > { %950 = dma.hbm_to_vmem [thread:$0]  (!%p1256_p11), %s1598_s0, 6400, %s148_s26, [#allocation3], %s1163_s30, %s1163_s30, %s1164_s4  }
  0x1f   : > { %p34_p6 = scmp.ge.s32.totalorder %s32_s28, 2  ;;  %s83_s7 = sadd.s32 1, %s1148_s14 }
  0x20   : > { %p90_p4 = scmp.ne.s32.totalorder %s1148_s14, %s1144_s13  ;;  %p91_p9 = scmp.eq.s32.totalorder %s1160_s17, 0 }
  0x21   : > { %s1619_s28 = smov (%p34_p6, %s32_s28), 0  ;;  %p960_p0 = scmp.lt.s32.totalorder %s1160_s17, 2 }
  0x22   : > { %p92_p12 = por %p91_p9, %p90_p4  ;;  %p1276_p13 = por %p1231_p2, %p90_p4 }
  0x23   : > { %s78_s9 = ssub.s32 %s1156_s16, %s1619_s28  ;;  %s164_s10 = sand.u32 1, %s1148_s14  }
  0x24   : > { %p81_p3 = scmp.eq.s32.totalorder %s78_s9, 0  ;;  %s935_s11 = smul.u32 200, %s164_s10 }
  0x25   : > { %s936_s19 = smul.u32 3200, %s1156_s16  ;;  %p1288_p11 = pnand %p960_p0, %p92_p12 }
  0x26   : > { %s1285_s18 = scalar_select %p81_p3, %s1148_s14, %s83_s7  }
  0x27   : > { %s168_s25 = scalar_lea.vmem [#allocation5], %s935_s11  ;;  %s175_s30 = scalar_lea.hbm %s1600_s2, %s936_s19 }
  0x28   : > { %s176_s26 = sshll.u32 %s168_s25, 4  ;;  %s165_s4 = scalar_lea.sflag [#allocation6], %s164_s10  ;;  %s177_s26 = int_to_ptr.vmem [resolvable:$true] %s176_s26 }
  0x29   : > { %p1050_p2 = pneg %p1288_p11  ;;  %s1061_s5 = scalar_lea.vmem %s177_s26, 3200 }
  0x2a   : > { %p1062_p5 = scmp.ne.s32.totalorder %s177_s26, %s1061_s5  ;;  %s1165_s6 = smov [#allocation5]  }
  0x2b   : > { %s1066_s7 = sshll.u32 %s1165_s6, 4  ;;  %s1067_s7 = int_to_ptr.vmem [resolvable:$false] %s1066_s7 }
  0x2c   : > { %p1064_p7 = pnand %p1062_p5, %p1050_p2  ;;  %s1068_s9 = scalar_lea.vmem %s1067_s7, 6400 }
  0x2d   : > { %p1069_p4 = scmp.lt.s32.totalorder %s177_s26, %s1067_s7  ;;  %p1070_p9 = scmp.lt.s32.totalorder %s1068_s9, %s1061_s5 }
  0x2e   : > { %p1065_p6 = pneg %p1064_p7 }
  0x2f   : > { %p1071_p12 = por %p1070_p9, %p1069_p4 }
  0x31   : > { %p1072_p0 = pnand %p1071_p12, %p1065_p6 }
  0x33   : > { %1075 = shalt.err (!%p1072_p0)
}
  0x34   : > { %s1166_s11 = smov 128   ;;  %s1167_s19 = smov 8  }
  0x35   : > { %954 = dma.hbm_to_vmem [thread:$0]  (!%p1288_p11), %s175_s30, 3200, %s177_s26, %s165_s4, %s1166_s11, %s1166_s11, %s1167_s19  }
  0x36   : > { %188 = sbr.rel (%p1247_p8) target bundleno = 375 (0x177), region = 32 }
  0x3b   : > { %1127 = dma.done.wait (%p1227_p1), [#allocation3], 6400  }
  0x3c   : > { %1129 = vsyncadd (%p1227_p1), [#allocation3], 4294960896  ;;  %s1306_s10 = sand.u32 1, %s1144_s13   ;;  %p1611_p3 = scmp.ne.s32.totalorder %s1605_s22, 0 }
  0x3d   : > { %s937_s25 = smul.u32 200, %s1306_s10  ;;  %s195_s29 = scalar_lea.sflag [#allocation6], %s1306_s10 }
  0x3f   : > { %s1312_s26 = scalar_lea.vmem [#allocation5], %s937_s25 }
  0x40   : > { %1131 = dma.done.wait (%p1611_p3), %s195_s29, 3200  }
  0x41   : > { %1133 = vsyncadd (%p1611_p3), %s195_s29, 4294964096  ;;  %v1168_v0 = vmov 0.0   ;;  %v1169_v1 = vmov 0   ;;  %v286_v2 = vld [vmem:[%s1312_s26 + $0x78] sm:$0xff]  ;;  %v285_v3 = vld [vmem:[%s1312_s26 + $0x70] sm:$0xff]  ;;  %vm446_vm0 = vcmask 588800  }
  0x42   : > { %522 = vmatprep.subr.mxu0 %v1168_v0  ;;  %885 = vmatprep.subr.mxu1 %v1168_v0  ;;  %v284_v4 = vld [vmem:[%s1312_s26 + $0x68] sm:$0xff]  ;;  %v283_v5 = vld [vmem:[%s1312_s26 + $0x60] sm:$0xff]  ;;  %v282_v6 = vld [vmem:[%s1312_s26 + $0x58] sm:$0xff]  ;;  %s1509_s30 = scalar_lea.vmem [#allocation7], %s937_s25  ;;  %s938_s25 = smul.u32 3200, %s1152_s15 }
  0x43   : > { %1020 = vset.pattern.permute.xlu0 %v1169_v1  ;;  %1021 = vset.pattern.permute.xlu1 %v1169_v1  ;;  %v281_v7 = vld [vmem:[%s1312_s26 + $0x50] sm:$0xff]  ;;  %v280_v8 = vld [vmem:[%s1312_s26 + $0x48] sm:$0xff]  ;;  %v279_v9 = vld [vmem:[%s1312_s26 + $0x40] sm:$0xff]  ;;  %s752_s4 = sshll.u32 %s1509_s30, 4  ;;  %s738_s15 = scalar_lea.sflag [#allocation4], %s1306_s10  ;;  %s1548_s4 = int_to_ptr.vmem [resolvable:$true] %s752_s4 }
  0x44   : > { %523 = vmatpush1.msra.mxu0 %v286_v2  ;;  %910 = vmatpush1.msra.mxu1 %v286_v2  ;;  %v278_v10 = vld [vmem:[%s1312_s26 + $0x38] sm:$0xff]  ;;  %v277_v11 = vld [vmem:[%s1312_s26 + $0x30] sm:$0xff]  ;;  %v276_v12 = vld [vmem:[%s1312_s26 + $0x28] sm:$0xff]  ;;  %s1546_s7 = scalar_lea.hbm %s1601_s3, %s938_s25  ;;  %s1076_s9 = scalar_lea.vmem %s1548_s4, 3200 }
  0x45   : > { %524 = vmatprep.subr.mxu0 %v1168_v0  ;;  %886 = vmatprep.subr.mxu1 %v1168_v0  ;;  %v275_v13 = vld [vmem:[%s1312_s26 + $0x20] sm:$0xff]  ;;  %v274_v14 = vld [vmem:[%s1312_s26 + $0x18] sm:$0xff]  ;;  %v273_v15 = vld [vmem:[%s1312_s26 + $0x10] sm:$0xff]  ;;  %p1077_p1 = scmp.ne.s32.totalorder %s1548_s4, %s1076_s9  ;;  %s1170_s11 = smov [#allocation7]  }
  0x46   : > { %525 = vmatpush1.msra.mxu0 %v285_v3  ;;  %911 = vmatpush1.msra.mxu1 %v285_v3  ;;  %v272_v16 = vld [vmem:[%s1312_s26 + $0x8] sm:$0xff]  ;;  %v271_v17 = vld [vmem:[%s1312_s26] sm:$0xff]  ;;  %v294_v19 = vld [vmem:[%s1312_s26 + $0xb8] sm:$0xff]  ;;  %s1080_s19 = sshll.u32 %s1170_s11, 4  ;;  %s1081_s19 = int_to_ptr.vmem [resolvable:$false] %s1080_s19 }
  0x47   : > { %526 = vmatprep.subr.mxu0 %v1168_v0  ;;  %887 = vmatprep.subr.mxu1 %v1168_v0  ;;  %v295_v18 = vld [vmem:[%s1312_s26 + $0xc0] sm:$0xff]  ;;  %v293_v20 = vld [vmem:[%s1312_s26 + $0xb0] sm:$0xff]  ;;  %v292_v21 = vld [vmem:[%s1312_s26 + $0xa8] sm:$0xff]  ;;  %p1078_p8 = pnand %p1077_p1, %p1276_p13  ;;  %s1082_s29 = scalar_lea.vmem %s1081_s19, 6400 }
  0x48   : > { %527 = vmatpush1.msra.mxu0 %v284_v4  ;;  %912 = vmatpush1.msra.mxu1 %v284_v4  ;;  %v291_v22 = vld [vmem:[%s1312_s26 + $0xa0] sm:$0xff]  ;;  %v290_v23 = vld [vmem:[%s1312_s26 + $0x98] sm:$0xff]  ;;  %v289_v24 = vld [vmem:[%s1312_s26 + $0x90] sm:$0xff]  ;;  %p1083_p2 = scmp.lt.s32.totalorder %s1548_s4, %s1081_s19  ;;  %p1084_p5 = scmp.lt.s32.totalorder %s1082_s29, %s1076_s9 }
  0x49   : > { %528 = vmatprep.subr.mxu0 %v1168_v0  ;;  %888 = vmatprep.subr.mxu1 %v1168_v0  ;;  %v288_v25 = vld [vmem:[%s1312_s26 + $0x88] sm:$0xff]  ;;  %v287_v26 = vld [vmem:[%s1312_s26 + $0x80] sm:$0xff]  ;;  %v222_v27 = vld [vmem:[#allocation2 + $0x8] sm:$0xff]  ;;  %p1079_p11 = pneg %p1078_p8 }
  0x4a   : > { %529 = vmatpush1.msra.mxu0 %v283_v5  ;;  %913 = vmatpush1.msra.mxu1 %v283_v5  ;;  %v248_v28 = vld [vmem:[#allocation2 + $0xd8] sm:$0xff]  ;;  %v221_v29 = vld [vmem:[#allocation2] sm:$0xff]  ;;  %v247_v30 = vld [vmem:[#allocation2 + $0xd0] sm:$0xff]  ;;  %p1085_p7 = por %p1084_p5, %p1083_p2 }
  0x4b   : > { %530 = vmatprep.subr.mxu0 %v1168_v0  ;;  %889 = vmatprep.subr.mxu1 %v1168_v0  ;;  %v224_v31 = vld [vmem:[#allocation2 + $0x18] sm:$0xff]  ;;  %v250_v32 = vld [vmem:[#allocation2 + $0xe8] sm:$0xff]  ;;  %v296_v33 = vld [vmem:[%s1599_s1] sm:$0xff] }
  0x4c   : > { %531 = vmatpush1.msra.mxu0 %v282_v6  ;;  %914 = vmatpush1.msra.mxu1 %v282_v6  ;;  %v298_v34 = vld [vmem:[%s1599_s1 + $0x10] sm:$0xff]  ;;  %v249_v36 = vld [vmem:[#allocation2 + $0xe0] sm:$0xff]  ;;  %v226_v37 = vld [vmem:[#allocation2 + $0x28] sm:$0xff]  ;;  %p1086_p6 = pnand %p1085_p7, %p1079_p11 }
  0x4d   : > { %532 = vmatprep.subr.mxu0 %v1168_v0  ;;  %890 = vmatprep.subr.mxu1 %v1168_v0  ;;  %v223_v35 = vld [vmem:[#allocation2 + $0x10] sm:$0xff]  ;;  %v252_v38 = vld [vmem:[#allocation2 + $0xf8] sm:$0xff]  ;;  %v297_v39 = vld [vmem:[%s1599_s1 + $0x8] sm:$0xff] }
  0x4e   : > { %533 = vmatpush1.msra.mxu0 %v281_v7  ;;  %915 = vmatpush1.msra.mxu1 %v281_v7  ;;  %v299_v40 = vld [vmem:[%s1599_s1 + $0x18] sm:$0xff]  ;;  %v225_v41 = vld [vmem:[#allocation2 + $0x20] sm:$0xff]  ;;  %v251_v42 = vld [vmem:[#allocation2 + $0xf0] sm:$0xff] }
  0x4f   : > { %534 = vmatprep.subr.mxu0 %v1168_v0  ;;  %891 = vmatprep.subr.mxu1 %v1168_v0  ;;  %v228_v43 = vld [vmem:[#allocation2 + $0x38] sm:$0xff]  ;;  %v254_v44 = vld [vmem:[#allocation2 + $0x108] sm:$0xff]  ;;  %v300_v45 = vld [vmem:[%s1599_s1 + $0x20] sm:$0xff] }
  0x50   : > { %535 = vmatpush1.msra.mxu0 %v280_v8  ;;  %916 = vmatpush1.msra.mxu1 %v280_v8  ;;  %v301_v46 = vld [vmem:[%s1599_s1 + $0x28] sm:$0xff]  ;;  %v227_v47 = vld [vmem:[#allocation2 + $0x30] sm:$0xff]  ;;  %v253_v48 = vld [vmem:[#allocation2 + $0x100] sm:$0xff] }
  0x51   : > { %536 = vmatprep.subr.mxu0 %v1168_v0  ;;  %892 = vmatprep.subr.mxu1 %v1168_v0  ;;  %v230_v49 = vld [vmem:[#allocation2 + $0x48] sm:$0xff]  ;;  %v256_v50 = vld [vmem:[#allocation2 + $0x118] sm:$0xff]  ;;  %v302_v51 = vld [vmem:[%s1599_s1 + $0x30] sm:$0xff] }
  0x52   : > { %537 = vmatpush1.msra.mxu0 %v279_v9  ;;  %917 = vmatpush1.msra.mxu1 %v279_v9  ;;  %v303_v52 = vld [vmem:[%s1599_s1 + $0x38] sm:$0xff]  ;;  %v229_v53 = vld [vmem:[#allocation2 + $0x40] sm:$0xff]  ;;  %v255_v54 = vld [vmem:[#allocation2 + $0x110] sm:$0xff] }
  0x53   : > { %538 = vmatprep.subr.mxu0 %v1168_v0  ;;  %893 = vmatprep.subr.mxu1 %v1168_v0  ;;  %v232_v55 = vld [vmem:[#allocation2 + $0x58] sm:$0xff]  ;;  %v258_v56 = vld [vmem:[#allocation2 + $0x128] sm:$0xff]  ;;  %v304_v57 = vld [vmem:[%s1599_s1 + $0x40] sm:$0xff] }
  0x54   : > { %539 = vmatpush1.msra.mxu0 %v278_v10  ;;  %918 = vmatpush1.msra.mxu1 %v278_v10  ;;  %v305_v58 = vld [vmem:[%s1599_s1 + $0x48] sm:$0xff]  ;;  %v231_v59 = vld [vmem:[#allocation2 + $0x50] sm:$0xff]  ;;  %v257_v60 = vld [vmem:[#allocation2 + $0x120] sm:$0xff] }
  0x55   : > { %540 = vmatprep.subr.mxu0 %v1168_v0  ;;  %894 = vmatprep.subr.mxu1 %v1168_v0  ;;  %v234_v61 = vld [vmem:[#allocation2 + $0x68] sm:$0xff]  ;;  %v260_v62 = vld [vmem:[#allocation2 + $0x138] sm:$0xff]  ;;  %v306_v63 = vld [vmem:[%s1599_s1 + $0x50] sm:$0xff] }
  0x56   : > { %541 = vmatpush1.msra.mxu0 %v277_v11  ;;  %919 = vmatpush1.msra.mxu1 %v277_v11  ;;  %v233_v1 = vld [vmem:[#allocation2 + $0x60] sm:$0xff]  ;;  %v259_v2 = vld [vmem:[#allocation2 + $0x130] sm:$0xff]  ;;  %v236_v3 = vld [vmem:[#allocation2 + $0x78] sm:$0xff] }
  0x57   : > { %542 = vmatprep.subr.mxu0 %v1168_v0  ;;  %895 = vmatprep.subr.mxu1 %v1168_v0  ;;  %v262_v4 = vld [vmem:[#allocation2 + $0x148] sm:$0xff]  ;;  %v308_v5 = vld [vmem:[%s1599_s1 + $0x60] sm:$0xff]  ;;  %v235_v7 = vld [vmem:[#allocation2 + $0x70] sm:$0xff] }
  0x58   : > { %543 = vmatpush1.msra.mxu0 %v276_v12  ;;  %920 = vmatpush1.msra.mxu1 %v276_v12  ;;  %v309_v6 = vld [vmem:[%s1599_s1 + $0x68] sm:$0xff]  ;;  %v261_v8 = vld [vmem:[#allocation2 + $0x140] sm:$0xff]  ;;  %v264_v10 = vld [vmem:[#allocation2 + $0x158] sm:$0xff] }
  0x59   : > { %544 = vmatprep.subr.mxu0 %v1168_v0  ;;  %896 = vmatprep.subr.mxu1 %v1168_v0  ;;  %v238_v9 = vld [vmem:[#allocation2 + $0x88] sm:$0xff]  ;;  %v310_v11 = vld [vmem:[%s1599_s1 + $0x70] sm:$0xff]  ;;  %v311_v12 = vld [vmem:[%s1599_s1 + $0x78] sm:$0xff] }
  0x5a   : > { %545 = vmatpush1.msra.mxu0 %v275_v13  ;;  %921 = vmatpush1.msra.mxu1 %v275_v13  ;;  %v237_v13 = vld [vmem:[#allocation2 + $0x80] sm:$0xff] }
  0x5b   : > { %546 = vmatprep.subr.mxu0 %v1168_v0  ;;  %897 = vmatprep.subr.mxu1 %v1168_v0 }
  0x5c   : > { %547 = vmatpush1.msra.mxu0 %v274_v14  ;;  %922 = vmatpush1.msra.mxu1 %v274_v14  ;;  %v263_v14 = vld [vmem:[#allocation2 + $0x150] sm:$0xff] }
  0x5d   : > { %548 = vmatprep.subr.mxu0 %v1168_v0  ;;  %898 = vmatprep.subr.mxu1 %v1168_v0 }
  0x5e   : > { %549 = vmatpush1.msra.mxu0 %v273_v15  ;;  %923 = vmatpush1.msra.mxu1 %v273_v15  ;;  %v240_v15 = vld [vmem:[#allocation2 + $0x98] sm:$0xff] }
  0x5f   : > { %550 = vmatprep.subr.mxu0 %v1168_v0  ;;  %899 = vmatprep.subr.mxu1 %v1168_v0 }
  0x60   : > { %551 = vmatpush1.msra.mxu0 %v272_v16  ;;  %924 = vmatpush1.msra.mxu1 %v272_v16  ;;  %v266_v16 = vld [vmem:[#allocation2 + $0x168] sm:$0xff] }
  0x61   : > { %552 = vmatprep.subr.mxu0 %v1168_v0  ;;  %900 = vmatprep.subr.mxu1 %v1168_v0 }
  0x62   : > { %553 = vmatpush1.msra.mxu0 %v271_v17  ;;  %925 = vmatpush1.msra.mxu1 %v271_v17  ;;  %v312_v17 = vld [vmem:[%s1599_s1 + $0x80] sm:$0xff] }
  0x63   : > { %568 = vmatprep.subr.mxu0 %v1168_v0  ;;  %901 = vmatprep.subr.mxu1 %v1168_v0 }
  0x64   : > { %569 = vmatpush2.msra.mxu0 %v295_v18  ;;  %926 = vmatpush2.msra.mxu1 %v295_v18  ;;  %v313_v18 = vld [vmem:[%s1599_s1 + $0x88] sm:$0xff] }
  0x65   : > { %570 = vmatprep.subr.mxu0 %v1168_v0  ;;  %902 = vmatprep.subr.mxu1 %v1168_v0 }
  0x66   : > { %571 = vmatpush2.msra.mxu0 %v294_v19  ;;  %927 = vmatpush2.msra.mxu1 %v294_v19  ;;  %v239_v19 = vld [vmem:[#allocation2 + $0x90] sm:$0xff] }
  0x67   : > { %572 = vmatprep.subr.mxu0 %v1168_v0  ;;  %903 = vmatprep.subr.mxu1 %v1168_v0 }
  0x68   : > { %573 = vmatpush2.msra.mxu0 %v293_v20  ;;  %928 = vmatpush2.msra.mxu1 %v293_v20  ;;  %v265_v20 = vld [vmem:[#allocation2 + $0x160] sm:$0xff] }
  0x69   : > { %574 = vmatprep.subr.mxu0 %v1168_v0  ;;  %904 = vmatprep.subr.mxu1 %v1168_v0 }
  0x6a   : > { %575 = vmatpush2.msra.mxu0 %v292_v21  ;;  %929 = vmatpush2.msra.mxu1 %v292_v21  ;;  %v242_v21 = vld [vmem:[#allocation2 + $0xa8] sm:$0xff] }
  0x6b   : > { %576 = vmatprep.subr.mxu0 %v1168_v0  ;;  %905 = vmatprep.subr.mxu1 %v1168_v0 }
  0x6c   : > { %577 = vmatpush2.msra.mxu0 %v291_v22  ;;  %930 = vmatpush2.msra.mxu1 %v291_v22  ;;  %v268_v22 = vld [vmem:[#allocation2 + $0x178] sm:$0xff] }
  0x6d   : > { %578 = vmatprep.subr.mxu0 %v1168_v0  ;;  %906 = vmatprep.subr.mxu1 %v1168_v0 }
  0x6e   : > { %579 = vmatpush2.msra.mxu0 %v290_v23  ;;  %931 = vmatpush2.msra.mxu1 %v290_v23  ;;  %v314_v23 = vld [vmem:[%s1599_s1 + $0x90] sm:$0xff] }
  0x6f   : > { %580 = vmatprep.subr.mxu0 %v1168_v0  ;;  %907 = vmatprep.subr.mxu1 %v1168_v0 }
  0x70   : > { %581 = vmatpush2.msra.mxu0 %v289_v24  ;;  %932 = vmatpush2.msra.mxu1 %v289_v24  ;;  %v315_v24 = vld [vmem:[%s1599_s1 + $0x98] sm:$0xff] }
  0x71   : > { %582 = vmatprep.subr.mxu0 %v1168_v0  ;;  %908 = vmatprep.subr.mxu1 %v1168_v0 }
  0x72   : > { %583 = vmatpush2.msra.mxu0 %v288_v25  ;;  %933 = vmatpush2.msra.mxu1 %v288_v25  ;;  %v241_v25 = vld [vmem:[#allocation2 + $0xa0] sm:$0xff] }
  0x73   : > { %584 = vmatprep.subr.mxu0 %v1168_v0  ;;  %909 = vmatprep.subr.mxu1 %v1168_v0  ;;  %v307_v0 = vld [vmem:[%s1599_s1 + $0x58] sm:$0xff] }
  0x74   : > { %585 = vmatpush2.msra.mxu0 %v287_v26  ;;  %934 = vmatpush2.msra.mxu1 %v287_v26  ;;  %v267_v26 = vld [vmem:[#allocation2 + $0x170] sm:$0xff] }
  0x75   : > { %857 = vmatprep.mubr.msk.f32.mxu0 %vm446_vm0, %v222_v27  ;;  %870 = vmatprep.mubr.msk.f32.mxu1 %vm446_vm0, %v248_v28  ;;  %v244_v27 = vld [vmem:[#allocation2 + $0xb8] sm:$0xff]  ;;  %v270_v28 = vld [vmem:[#allocation2 + $0x188] sm:$0xff] }
  0x76   : > { %587 = vmatmul.mubr.f32.vlgmr.msra.gmra.mxu0 %v221_v29  ;;  %652 = vmatmul.mubr.f32.vlgmr.msra.gmra.mxu1 %v247_v30  ;;  %v316_v29 = vld [vmem:[%s1599_s1 + $0xa0] sm:$0xff]  ;;  %v317_v30 = vld [vmem:[%s1599_s1 + $0xa8] sm:$0xff] }
  0x77   : > { %858 = vmatprep.mubr.msk.f32.mxu0 %vm446_vm0, %v224_v31  ;;  %871 = vmatprep.mubr.msk.f32.mxu1 %vm446_vm0, %v250_v32  ;;  %v243_v31 = vld [vmem:[#allocation2 + $0xb0] sm:$0xff]  ;;  %v269_v32 = vld [vmem:[#allocation2 + $0x180] sm:$0xff] }
  0x78   : > { %323 = vperm.xlu0 %1020, %v296_v33   ;;  %333 = vperm.xlu1 %1021, %v298_v34   ;;  %v246_v33 = vld [vmem:[#allocation2 + $0xc8] sm:$0xff]  ;;  %v318_v34 = vld [vmem:[%s1599_s1 + $0xb0] sm:$0xff] }
  0x7a   : > { %592 = vmatmul.mubr.f32.gmra.mxu0 %v223_v35  ;;  %657 = vmatmul.mubr.f32.gmra.mxu1 %v249_v36  ;;  %v319_v35 = vld [vmem:[%s1599_s1 + $0xb8] sm:$0xff]  ;;  %v245_v36 = vld [vmem:[#allocation2 + $0xc0] sm:$0xff] }
  0x7b   : > { %859 = vmatprep.mubr.msk.f32.mxu0 %vm446_vm0, %v226_v37  ;;  %872 = vmatprep.mubr.msk.f32.mxu1 %vm446_vm0, %v252_v38  ;;  %v320_v37 = vld [vmem:[%s1599_s1 + $0xc0] sm:$0xff] }
  0x7c   : > { %328 = vperm.xlu0 %1020, %v297_v39   ;;  %338 = vperm.xlu1 %1021, %v299_v40  }
  0x7e   : > { %597 = vmatmul.mubr.f32.gmra.mxu0 %v225_v41  ;;  %662 = vmatmul.mubr.f32.gmra.mxu1 %v251_v42 }
  0x7f   : > { %860 = vmatprep.mubr.msk.f32.mxu0 %vm446_vm0, %v228_v43  ;;  %873 = vmatprep.mubr.msk.f32.mxu1 %vm446_vm0, %v254_v44 }
  0x80   : > { %343 = vperm.xlu0 %1020, %v300_v45   ;;  %348 = vperm.xlu1 %1021, %v301_v46  }
  0x82   : > { %602 = vmatmul.mubr.f32.gmra.mxu0 %v227_v47  ;;  %667 = vmatmul.mubr.f32.gmra.mxu1 %v253_v48 }
  0x83   : > { %861 = vmatprep.mubr.msk.f32.mxu0 %vm446_vm0, %v230_v49  ;;  %874 = vmatprep.mubr.msk.f32.mxu1 %vm446_vm0, %v256_v50 }
  0x84   : > { %353 = vperm.xlu0 %1020, %v302_v51   ;;  %358 = vperm.xlu1 %1021, %v303_v52  }
  0x86   : > { %607 = vmatmul.mubr.f32.gmra.mxu0 %v229_v53  ;;  %672 = vmatmul.mubr.f32.gmra.mxu1 %v255_v54 }
  0x87   : > { %862 = vmatprep.mubr.msk.f32.mxu0 %vm446_vm0, %v232_v55  ;;  %875 = vmatprep.mubr.msk.f32.mxu1 %vm446_vm0, %v258_v56 }
  0x88   : > { %363 = vperm.xlu0 %1020, %v304_v57   ;;  %368 = vperm.xlu1 %1021, %v305_v58  }
  0x8a   : > { %612 = vmatmul.mubr.f32.gmra.mxu0 %v231_v59  ;;  %677 = vmatmul.mubr.f32.gmra.mxu1 %v257_v60 }
  0x8b   : > { %863 = vmatprep.mubr.msk.f32.mxu0 %vm446_vm0, %v234_v61  ;;  %876 = vmatprep.mubr.msk.f32.mxu1 %vm446_vm0, %v260_v62 }
  0x8c   : > { %373 = vperm.xlu0 %1020, %v306_v63   ;;  %378 = vperm.xlu1 %1021, %v307_v0  }
  0x8e   : > { %617 = vmatmul.mubr.f32.gmra.mxu0 %v233_v1  ;;  %682 = vmatmul.mubr.f32.gmra.mxu1 %v259_v2 }
  0x8f   : > { %864 = vmatprep.mubr.msk.f32.mxu0 %vm446_vm0, %v236_v3  ;;  %877 = vmatprep.mubr.msk.f32.mxu1 %vm446_vm0, %v262_v4 }
  0x90   : > { %383 = vperm.xlu0 %1020, %v308_v5   ;;  %388 = vperm.xlu1 %1021, %v309_v6  }
  0x92   : > { %622 = vmatmul.mubr.f32.gmra.mxu0 %v235_v7  ;;  %687 = vmatmul.mubr.f32.gmra.mxu1 %v261_v8 }
  0x93   : > { %865 = vmatprep.mubr.msk.f32.mxu0 %vm446_vm0, %v238_v9  ;;  %878 = vmatprep.mubr.msk.f32.mxu1 %vm446_vm0, %v264_v10 }
  0x94   : > { %393 = vperm.xlu0 %1020, %v310_v11   ;;  %398 = vperm.xlu1 %1021, %v311_v12  }
  0x96   : > { %627 = vmatmul.mubr.f32.gmra.mxu0 %v237_v13  ;;  %692 = vmatmul.mubr.f32.gmra.mxu1 %v263_v14 }
  0x97   : > { %866 = vmatprep.mubr.msk.f32.mxu0 %vm446_vm0, %v240_v15  ;;  %879 = vmatprep.mubr.msk.f32.mxu1 %vm446_vm0, %v266_v16 }
  0x98   : > { %403 = vperm.xlu0 %1020, %v312_v17   ;;  %408 = vperm.xlu1 %1021, %v313_v18  }
  0x9a   : > { %632 = vmatmul.mubr.f32.gmra.mxu0 %v239_v19  ;;  %697 = vmatmul.mubr.f32.gmra.mxu1 %v265_v20 }
  0x9b   : > { %867 = vmatprep.mubr.msk.f32.mxu0 %vm446_vm0, %v242_v21  ;;  %880 = vmatprep.mubr.msk.f32.mxu1 %vm446_vm0, %v268_v22 }
  0x9c   : > { %413 = vperm.xlu0 %1020, %v314_v23   ;;  %418 = vperm.xlu1 %1021, %v315_v24  }
  0x9e   : > { %637 = vmatmul.mubr.f32.gmra.mxu0 %v241_v25  ;;  %702 = vmatmul.mubr.f32.gmra.mxu1 %v267_v26 }
  0x9f   : > { %868 = vmatprep.mubr.msk.f32.mxu0 %vm446_vm0, %v244_v27  ;;  %881 = vmatprep.mubr.msk.f32.mxu1 %vm446_vm0, %v270_v28 }
  0xa0   : > { %423 = vperm.xlu0 %1020, %v316_v29   ;;  %428 = vperm.xlu1 %1021, %v317_v30  }
  0xa2   : > { %642 = vmatmul.mubr.f32.gmra.mxu0 %v243_v31  ;;  %707 = vmatmul.mubr.f32.gmra.mxu1 %v269_v32 }
  0xa3   : > { %869 = vmatprep.mubr.msk.f32.mxu0 %vm446_vm0, %v246_v33 }
  0xa4   : > { %433 = vperm.xlu0 %1020, %v318_v34   ;;  %438 = vperm.xlu1 %1021, %v319_v35  }
  0xa6   : > { %647 = vmatmul.mubr.f32.gmra.mxu0 %v245_v36 }
  0xa8   : > { %443 = vperm.xlu0 %1020, %v320_v37  }
  0xf3   : > { %v324_v38 = vpop.permute.xlu0 %323  ;;  %v334_v39 = vpop.permute.xlu1 %333 }
  0xf7   : > { %v329_v40 = vpop.permute.xlu0 %328  ;;  %v339_v41 = vpop.permute.xlu1 %338 }
  0xfb   : > { %v344_v42 = vpop.permute.xlu0 %343  ;;  %v349_v43 = vpop.permute.xlu1 %348 }
  0xff   : > { %v1493_v44 = vpop.permute.xlu0 %353  ;;  %v1495_v45 = vpop.permute.xlu1 %358 }
 0x103   : > { %v1497_v46 = vpop.permute.xlu0 %363  ;;  %v1499_v47 = vpop.permute.xlu1 %368 }
 0x107   : > { %v1501_v48 = vpop.permute.xlu0 %373  ;;  %v1503_v49 = vpop.permute.xlu1 %378 }
 0x10b   : > { %v1505_v50 = vpop.permute.xlu0 %383  ;;  %v389_v51 = vpop.permute.xlu1 %388 }
 0x10f   : > { %v394_v58 = vpop.permute.xlu0 %393  ;;  %v399_v1 = vpop.permute.xlu1 %398 }
 0x113   : > { %v404_v8 = vpop.permute.xlu0 %403  ;;  %v409_v15 = vpop.permute.xlu1 %408 }
 0x117   : > { %v414_v22 = vpop.permute.xlu0 %413  ;;  %v419_v29 = vpop.permute.xlu1 %418 }
 0x11b   : > { %v424_v36 = vpop.permute.xlu0 %423 }
 0x136   : > { %v588_v52 = vpop.f32.mrf.mxu0  ;;  %v653_v53 = vpop.f32.mrf.mxu1 }
 0x137   : > { %v589_v54 = vadd.f32 %v588_v52, %v324_v38  ;;  %v654_v55 = vadd.f32 %v653_v53, %v389_v51 }
 0x138   : > { %v590_v56 = vpop.f32.mrf.mxu0  ;;  %v655_v57 = vpop.f32.mrf.mxu1 }
 0x139   : > { %712 = vst [vmem:[%s1509_s30] sm:$0xff] %v589_v54  ;;  %725 = vst [vmem:[%s1509_s30 + $0x68] sm:$0xff] %v654_v55  ;;  %v434_v56 = vpop.permute.xlu0 %433 }
 0x13a   : > { %v593_v59 = vpop.f32.mrf.mxu0  ;;  %v658_v60 = vpop.f32.mrf.mxu1 }
 0x13b   : > { %v594_v61 = vadd.f32 %v593_v59, %v329_v40  ;;  %v659_v62 = vadd.f32 %v658_v60, %v394_v58 }
 0x13c   : > { %v595_v63 = vpop.f32.mrf.mxu0  ;;  %v660_v0 = vpop.f32.mrf.mxu1 }
 0x13d   : > { %713 = vst [vmem:[%s1509_s30 + $0x8] sm:$0xff] %v594_v61  ;;  %726 = vst [vmem:[%s1509_s30 + $0x70] sm:$0xff] %v659_v62 }
 0x13e   : > { %v598_v2 = vpop.f32.mrf.mxu0  ;;  %v663_v3 = vpop.f32.mrf.mxu1 }
 0x13f   : > { %v599_v4 = vadd.f32 %v598_v2, %v334_v39  ;;  %v664_v5 = vadd.f32 %v663_v3, %v399_v1 }
 0x140   : > { %v600_v6 = vpop.f32.mrf.mxu0  ;;  %v665_v7 = vpop.f32.mrf.mxu1 }
 0x141   : > { %714 = vst [vmem:[%s1509_s30 + $0x10] sm:$0xff] %v599_v4  ;;  %727 = vst [vmem:[%s1509_s30 + $0x78] sm:$0xff] %v664_v5  ;;  %v444_v4 = vpop.permute.xlu0 %443 }
 0x142   : > { %v603_v9 = vpop.f32.mrf.mxu0  ;;  %v668_v10 = vpop.f32.mrf.mxu1 }
 0x143   : > { %v604_v11 = vadd.f32 %v603_v9, %v339_v41  ;;  %v669_v12 = vadd.f32 %v668_v10, %v404_v8 }
 0x144   : > { %v605_v13 = vpop.f32.mrf.mxu0  ;;  %v670_v14 = vpop.f32.mrf.mxu1 }
 0x145   : > { %715 = vst [vmem:[%s1509_s30 + $0x18] sm:$0xff] %v604_v11  ;;  %728 = vst [vmem:[%s1509_s30 + $0x80] sm:$0xff] %v669_v12 }
 0x146   : > { %v608_v16 = vpop.f32.mrf.mxu0  ;;  %v673_v17 = vpop.f32.mrf.mxu1 }
 0x147   : > { %v609_v18 = vadd.f32 %v608_v16, %v344_v42  ;;  %v674_v19 = vadd.f32 %v673_v17, %v409_v15 }
 0x148   : > { %v610_v20 = vpop.f32.mrf.mxu0  ;;  %v675_v21 = vpop.f32.mrf.mxu1 }
 0x149   : > { %716 = vst [vmem:[%s1509_s30 + $0x20] sm:$0xff] %v609_v18  ;;  %729 = vst [vmem:[%s1509_s30 + $0x88] sm:$0xff] %v674_v19 }
 0x14a   : > { %v613_v23 = vpop.f32.mrf.mxu0  ;;  %v678_v24 = vpop.f32.mrf.mxu1 }
 0x14b   : > { %v614_v25 = vadd.f32 %v613_v23, %v349_v43  ;;  %v679_v26 = vadd.f32 %v678_v24, %v414_v22  ;;  %v429_v43 = vpop.permute.xlu1 %428 }
 0x14c   : > { %v615_v27 = vpop.f32.mrf.mxu0  ;;  %v680_v28 = vpop.f32.mrf.mxu1 }
 0x14d   : > { %717 = vst [vmem:[%s1509_s30 + $0x28] sm:$0xff] %v614_v25  ;;  %730 = vst [vmem:[%s1509_s30 + $0x90] sm:$0xff] %v679_v26 }
 0x14e   : > { %v618_v30 = vpop.f32.mrf.mxu0  ;;  %v683_v31 = vpop.f32.mrf.mxu1 }
 0x14f   : > { %v619_v32 = vadd.f32 %v618_v30, %v1493_v44  ;;  %v684_v33 = vadd.f32 %v683_v31, %v419_v29  ;;  %v439_v62 = vpop.permute.xlu1 %438 }
 0x150   : > { %v620_v34 = vpop.f32.mrf.mxu0  ;;  %v685_v35 = vpop.f32.mrf.mxu1 }
 0x151   : > { %718 = vst [vmem:[%s1509_s30 + $0x30] sm:$0xff] %v619_v32  ;;  %731 = vst [vmem:[%s1509_s30 + $0x98] sm:$0xff] %v684_v33 }
 0x152   : > { %v623_v37 = vpop.f32.mrf.mxu0  ;;  %v688_v38 = vpop.f32.mrf.mxu1 }
 0x153   : > { %v624_v39 = vadd.f32 %v623_v37, %v1495_v45  ;;  %v689_v40 = vadd.f32 %v688_v38, %v424_v36 }
 0x154   : > { %v625_v41 = vpop.f32.mrf.mxu0  ;;  %v690_v42 = vpop.f32.mrf.mxu1 }
 0x155   : > { %719 = vst [vmem:[%s1509_s30 + $0x38] sm:$0xff] %v624_v39  ;;  %732 = vst [vmem:[%s1509_s30 + $0xa0] sm:$0xff] %v689_v40 }
 0x156   : > { %v628_v51 = vpop.f32.mrf.mxu0  ;;  %v693_v44 = vpop.f32.mrf.mxu1 }
 0x157   : > { %v629_v52 = vadd.f32 %v628_v51, %v1497_v46  ;;  %v694_v53 = vadd.f32 %v693_v44, %v429_v43 }
 0x158   : > { %v630_v54 = vpop.f32.mrf.mxu0  ;;  %v695_v55 = vpop.f32.mrf.mxu1 }
 0x159   : > { %720 = vst [vmem:[%s1509_s30 + $0x40] sm:$0xff] %v629_v52  ;;  %733 = vst [vmem:[%s1509_s30 + $0xa8] sm:$0xff] %v694_v53 }
 0x15a   : > { %v633_v57 = vpop.f32.mrf.mxu0  ;;  %v698_v45 = vpop.f32.mrf.mxu1 }
 0x15b   : > { %v634_v58 = vadd.f32 %v633_v57, %v1499_v47  ;;  %v699_v59 = vadd.f32 %v698_v45, %v434_v56 }
 0x15c   : > { %v635_v60 = vpop.f32.mrf.mxu0  ;;  %v700_v61 = vpop.f32.mrf.mxu1 }
 0x15d   : > { %721 = vst [vmem:[%s1509_s30 + $0x48] sm:$0xff] %v634_v58  ;;  %734 = vst [vmem:[%s1509_s30 + $0xb0] sm:$0xff] %v699_v59 }
 0x15e   : > { %v638_v46 = vpop.f32.mrf.mxu0  ;;  %v703_v63 = vpop.f32.mrf.mxu1 }
 0x15f   : > { %v639_v0 = vadd.f32 %v638_v46, %v1501_v48  ;;  %v704_v1 = vadd.f32 %v703_v63, %v439_v62 }
 0x160   : > { %v640_v2 = vpop.f32.mrf.mxu0  ;;  %v705_v3 = vpop.f32.mrf.mxu1 }
 0x161   : > { %722 = vst [vmem:[%s1509_s30 + $0x50] sm:$0xff] %v639_v0  ;;  %735 = vst [vmem:[%s1509_s30 + $0xb8] sm:$0xff] %v704_v1 }
 0x162   : > { %v643_v47 = vpop.f32.mrf.mxu0  ;;  %v708_v5 = vpop.f32.mrf.mxu1 }
 0x163   : > { %v644_v6 = vadd.f32 %v643_v47, %v1503_v49  ;;  %v709_v7 = vadd.f32 %v708_v5, %v444_v4 }
 0x164   : > { %v645_v8 = vpop.f32.mrf.mxu0  ;;  %v710_v9 = vpop.f32.mrf.mxu1 }
 0x165   : > { %723 = vst [vmem:[%s1509_s30 + $0x58] sm:$0xff] %v644_v6  ;;  %736 = vst [vmem:[%s1509_s30 + $0xc0] sm:$0xff] %v709_v7 }
 0x166   : > { %v648_v48 = vpop.f32.mrf.mxu0 }
 0x167   : > { %v649_v49 = vadd.f32 %v648_v48, %v1505_v50 }
 0x168   : > { %v650_v10 = vpop.f32.mrf.mxu0 }
 0x169   : > { %724 = vst [vmem:[%s1509_s30 + $0x60] sm:$0xff] %v649_v49 }
 0x16a   : > { %1089 = shalt.err (!%p1086_p6)
}
 0x16b   : > { %s1090_s26 = scalar_lea.hbm %s1546_s7, 3200  ;;  %s1094_s24 = scalar_lea.hbm %s1601_s3, 6400 }
 0x16c   : > { %p1091_p4 = scmp.ne.s32.totalorder %s1546_s7, %s1090_s26  ;;  %p1095_p0 = scmp.lt.s32.totalorder %s1546_s7, %s1601_s3 }
 0x16d   : > { %p1096_p3 = scmp.lt.s32.totalorder %s1094_s24, %s1090_s26 }
 0x16e   : > { %p1092_p9 = pnand %p1091_p4, %p1276_p13 }
 0x16f   : > { %p1097_p1 = por %p1096_p3, %p1095_p0 }
 0x170   : > { %p1093_p12 = pneg %p1092_p9 }
 0x172   : > { %p1098_p8 = pnand %p1097_p1, %p1093_p12 }
 0x174   : > { %1101 = shalt.err (!%p1098_p8)
}
 0x175   : > { %s1171_s30 = smov 128   ;;  %s1172_s25 = smov 8  }
 0x176   : > { %945 = dma.vmem_to_hbm [thread:$0]  (%p1276_p13), %s1548_s4, 3200, %s1546_s7, %s738_s15, %s1171_s30, %s1171_s30, %s1172_s25  }
 0x177 PF: > { %s767_s5 = sand.u32 1, %s1140_s12   ;;  %p1612_p11 = scmp.ne.s32.totalorder %s1606_s23, 0 }
 0x178   : > { %s768_s6 = scalar_lea.sflag [#allocation4], %s767_s5 }
 0x179   : > { %p956_p2 = pnand %p853_p10, %p1612_p11 }
 0x17b   : > { %p957_p5 = pneg %p956_p2 }
 0x17d   : > { %1135 = dma.done.wait (%p957_p5), %s768_s6, 3200  }
 0x17e   : > { %1137 = vsyncadd (%p957_p5), %s768_s6, 4294964096  ;;  %s20_s17 = sadd.s32 1, %s1160_s17   ;;  %s1613_s12 = smov %s1144_s13 }
 0x17f   : > { %p17_p7 = scmp.ge.s32.totalorder %s20_s17, 4   ;;  %s1614_s13 = smov %s1148_s14 }
 0x180   : > { %s1615_s14 = smov %s1285_s18  ;;  %s1616_s15 = smov %s1156_s16 }
 0x181   : > { %s1617_s16 = smov %s1619_s28  ;;  %19 = sbr.rel (!%p17_p7) target bundleno = 7 (0x7), region = 82 }
 0x186   :  { %773 = vsyncpa [#allocation3], 1 }
 0x187   :  { %775 = vsyncpa [#allocation3 + $0x1], 1 }
 0x188   :  { %776 = vsyncpa [#allocation6], 1 }
 0x189   :  { %778 = vsyncpa [#allocation6 + $0x1], 1 }
 0x18a   :  { %779 = vsyncpa [#allocation4], 1 }
 0x18b   :  { %781 = vsyncpa [#allocation4 + $0x1], 1 }

</bundles_post_ra>
